<compile_context>
chip_gen: v5e
topology: v5e:2x2
jax: 0.10.0
libtpu: 0.0.40
codegen_flags: <defaults>
</compile_context>

<pallas_src>
import functools

import jax
import jax.numpy as jnp
from jax import lax
from jax.experimental import pallas as pl
from jax.experimental.pallas import tpu as pltpu

LANE = 128
MAX_BLOCK_ROWS = 2048          # 2048 * 128 * 4B = 1 MiB f32 tile per input
THRESHOLD = 0.95


def _over_exposure_kernel(x_ref, m_ref, out_ref, *, rows, block_rows, needs_mask):
    """Per-block partial sums of max(x - 0.95, 0) * mask and of mask."""
    xv = x_ref[...].astype(jnp.float32)
    mv = m_ref[...].astype(jnp.float32)

    if needs_mask:
        # Only needed when the last grid block hangs off the end of the array
        # (Pallas pads such blocks with undefined data -> mask it out).
        row0 = pl.program_id(0) * block_rows
        row_idx = lax.broadcasted_iota(jnp.int32, (block_rows, LANE), 0) + row0
        valid = row_idx < rows
        xv = jnp.where(valid, xv, 0.0)
        mv = jnp.where(valid, mv, 0.0)

    contrib = jnp.maximum(xv - THRESHOLD, 0.0) * mv
    out_ref[0, 0] = jnp.sum(contrib)   # partial sum(loss * mask)
    out_ref[0, 1] = jnp.sum(mv)        # partial sum(mask)


@functools.partial(jax.jit, static_argnames=("weight",))
def over_exposure_loss(x, mask, weight=1.0):
    """Pallas implementation of OverExposureLoss.forward (returns a scalar)."""
    xf = x.reshape(-1)
    mf = mask.reshape(-1)
    n = xf.size

    rem = n % LANE
    if rem:
        # TODO(synk): this <128-element remainder pad still materializes a copy
        # via jnp.pad; zero padding is exact (adds 0 to both sums).
        pad = LANE - rem
        xf = jnp.pad(xf, (0, pad))
        mf = jnp.pad(mf, (0, pad))

    rows = xf.size // LANE
    x2 = xf.reshape(rows, LANE)
    m2 = mf.reshape(rows, LANE)

    block_rows = rows if rows <= MAX_BLOCK_ROWS else MAX_BLOCK_ROWS
    nblocks = pl.cdiv(rows, block_rows)
    needs_mask = (rows % block_rows) != 0

    kernel = functools.partial(
        _over_exposure_kernel,
        rows=rows, block_rows=block_rows, needs_mask=needs_mask,
    )
    tile = pl.BlockSpec((block_rows, LANE), lambda b: (b, 0))

    in_bytes = x2.size * x2.dtype.itemsize + m2.size * m2.dtype.itemsize
    partials = pl.pallas_call(
        kernel,
        out_shape=jax.ShapeDtypeStruct((nblocks, 2), jnp.float32),
        grid_spec=pltpu.PrefetchScalarGridSpec(
            num_scalar_prefetch=0,
            grid=(nblocks,),
            in_specs=[tile, tile],
            out_specs=pl.BlockSpec((1, 2), lambda b: (b, 0),
                                   memory_space=pltpu.SMEM),
        ),
        compiler_params=pltpu.CompilerParams(
            dimension_semantics=("parallel",),
        ),
        cost_estimate=pl.CostEstimate(
            flops=5 * n,
            transcendentals=0,
            bytes_accessed=in_bytes + nblocks * 2 * 4,
        ),
    )(x2, m2)

    total = jnp.sum(partials, axis=0)   # (2,) = [sum(loss*mask), sum(mask)]
    return jnp.float32(weight) * total[0] / total[1]


def _reference(x, mask, weight=1.0):
    return weight * (jnp.maximum(x - THRESHOLD, 0.0) * mask).sum() / jnp.sum(mask)


if __name__ == "__main__":
    key = jax.random.PRNGKey(0)
    k1, k2, k3, k4 = jax.random.split(key, 4)

    # Case 1: image-like NCHW input, numel % 128 == 0 (zero-copy path).
    B, C, H, W = 2, 4, 16, 16
    x = jax.random.uniform(k1, (B, C, H, W), dtype=jnp.float32)        # [0,1) intensities
    mask = (jax.random.uniform(k2, (B, C, H, W)) > 0.5).astype(jnp.float32)
    out = jax.block_until_ready(over_exposure_loss(x, mask, weight=1.0))
    ref = _reference(x, mask, weight=1.0)
    assert jnp.allclose(out, ref, atol=1e-6, rtol=1e-5), (out, ref)

    # Case 2: odd-sized input (exercises the remainder-pad fallback) + weight.
    x2 = jax.random.uniform(k3, (2, 3, 10, 10), dtype=jnp.float32)
    m2 = (jax.random.uniform(k4, (2, 3, 10, 10)) > 0.3).astype(jnp.float32)
    out2 = jax.block_until_ready(over_exposure_loss(x2, m2, weight=0.5))
    ref2 = _reference(x2, m2, weight=0.5)
    assert jnp.allclose(out2, ref2, atol=1e-6, rtol=1e-5), (out2, ref2)

    print("KERNEL_OK")
</pallas_src>

<mosaic_0001>
module attributes {stable_mosaic.version = 11 : i64} {
  func.func @_over_exposure_kernel(%arg0: i32, %arg1: memref<16x128xf32, #tpu.memory_space<vmem>>, %arg2: memref<16x128xf32, #tpu.memory_space<vmem>>, %arg3: memref<1x2xf32, #tpu.memory_space<smem>>) attributes {dimension_semantics = [#tpu.dimension_semantics<parallel>], iteration_bounds = array<i64: 1>, scalar_prefetch = 0 : i64, scratch_operands = 0 : i64, tpu.core_type = #tpu.core_type<tc>, window_params = [{transform_indices = @transform_0, window_bounds = array<i64: 16, 128>}, {transform_indices = @transform_1, window_bounds = array<i64: 16, 128>}, {transform_indices = @transform_2, window_bounds = array<i64: 1, 2>}]} {
    %c0 = arith.constant 0 : index
    %c0_0 = arith.constant 0 : index
    %0 = vector.load %arg1[%c0, %c0_0] : memref<16x128xf32, #tpu.memory_space<vmem>>, vector<16x128xf32>
    %c0_1 = arith.constant 0 : index
    %c0_2 = arith.constant 0 : index
    %1 = vector.load %arg2[%c0_1, %c0_2] : memref<16x128xf32, #tpu.memory_space<vmem>>, vector<16x128xf32>
    %cst = arith.constant 0.949999988 : f32
    %2 = vector.broadcast %cst : f32 to vector<16x128xf32>
    %3 = arith.subf %0, %2 : vector<16x128xf32>
    %cst_3 = arith.constant 0.000000e+00 : f32
    %4 = vector.broadcast %cst_3 : f32 to vector<16x128xf32>
    %5 = arith.maximumf %3, %4 : vector<16x128xf32>
    %6 = arith.mulf %5, %1 : vector<16x128xf32>
    %7 = vector.shape_cast %6 : vector<16x128xf32> to vector<1x16x128xf32>
    %cst_4 = arith.constant dense<0.000000e+00> : vector<1xf32>
    %8 = vector.multi_reduction <add>, %7, %cst_4 [1, 2] : vector<1x16x128xf32> to vector<1xf32>
    %9 = vector.shape_cast %8 : vector<1xf32> to vector<1x1x1xf32>
    %10 = vector.extract %9[0, 0, 0] : f32 from vector<1x1x1xf32>
    %c0_5 = arith.constant 0 : index
    %c0_6 = arith.constant 0 : index
    %11 = memref.load %arg3[%c0_5, %c0_6] : memref<1x2xf32, #tpu.memory_space<smem>>
    memref.store %10, %arg3[%c0_5, %c0_6] : memref<1x2xf32, #tpu.memory_space<smem>>
    %12 = vector.shape_cast %1 : vector<16x128xf32> to vector<1x16x128xf32>
    %cst_7 = arith.constant dense<0.000000e+00> : vector<1xf32>
    %13 = vector.multi_reduction <add>, %12, %cst_7 [1, 2] : vector<1x16x128xf32> to vector<1xf32>
    %14 = vector.shape_cast %13 : vector<1xf32> to vector<1x1x1xf32>
    %15 = vector.extract %14[0, 0, 0] : f32 from vector<1x1x1xf32>
    %c0_8 = arith.constant 0 : index
    %c1 = arith.constant 1 : index
    %16 = memref.load %arg3[%c0_8, %c1] : memref<1x2xf32, #tpu.memory_space<smem>>
    memref.store %15, %arg3[%c0_8, %c1] : memref<1x2xf32, #tpu.memory_space<smem>>
    return
  }
  func.func @transform_0(%arg0: i32) -> (i32, i32) {
    %c0_i32 = arith.constant 0 : i32
    %c0_i32_0 = arith.constant 0 : i32
    return %arg0, %c0_i32 : i32, i32
  }
  func.func @transform_1(%arg0: i32) -> (i32, i32) {
    %c0_i32 = arith.constant 0 : i32
    %c0_i32_0 = arith.constant 0 : i32
    return %arg0, %c0_i32 : i32, i32
  }
  func.func @transform_2(%arg0: i32) -> (i32, i32) {
    %c0_i32 = arith.constant 0 : i32
    %c0_i32_0 = arith.constant 0 : i32
    return %arg0, %c0_i32 : i32, i32
  }
}

</mosaic_0001>

<bundles_post_ra>
// kernel: over_exposure_loss.1
= control target key start
LH: loop header
LB: loop body
LE: loop exit
PB: predicated region body
PF: predicated region fallthrough
CT: control target
= control target key end

     0   :  { %s113_s0 = inlined_call_operand.vmem [shape: f32[16,128], index: 0, kind: input, shape index: {}]   ;;  %s114_s1 = inlined_call_operand.vmem [shape: f32[16,128], index: 1, kind: input, shape index: {}]   ;;  %s115_s2 = inlined_call_operand.vmem [shape: f32[1,2], index: 2, kind: output, shape index: {}]  }
   0x1   :  { %v12_v0 = vld [vmem:[%s113_s0] sm:$0xff]  ;;  %v13_v1 = vld [vmem:[%s113_s0 + $0x8] sm:$0xff] }
   0x2   :  { %v61_v2 = vadd.f32 -0.95, %v12_v0  ;;  %v62_v3 = vadd.f32 -0.95, %v13_v1  ;;  %v14_v4 = vld [vmem:[%s114_s1] sm:$0xff]  ;;  %v15_v5 = vld [vmem:[%s114_s1 + $0x8] sm:$0xff] }
   0x3   :  { %7 = vsyncpa [#allocation3], 0  ;;  %v34_v11 = vadd.f32 %v15_v5, %v14_v4  ;;  %s51_s18 = sshll.u32 %s115_s2, 4  ;;  %s82_s20 = smov [#allocation2]   ;;  %s52_s18 = int_to_ptr.vmem [resolvable:$true] %s51_s18 }
   0x4   :  { %v18_v6 = vmax.f32 %v61_v2, 0.0  ;;  %v19_v7 = vmax.f32 %v62_v3, 0.0 }
   0x6   :  { %v20_v8 = vmul.f32 %v18_v6, %v14_v4  ;;  %v21_v9 = vmul.f32 %v19_v7, %v15_v5 }
   0x8   :  { %v22_v10 = vadd.f32 %v21_v9, %v20_v8 }
   0xa   :  { %23 = vadd.xlane.f32.xlu0 %v22_v10 }
  0x12   :  { %35 = vadd.xlane.f32.xlu0 %v34_v11 }
  0x7d   :  { %v24_v12 = vpop.xlane.xlu0 %23 }
  0x7e   :  { %v25_v13 = vrot.slane %v24_v12, 4 }
  0x80   :  { %v26_v14 = vadd.f32 %v25_v13, %v24_v12 }
  0x82   :  { %v27_v15 = vrot.slane %v26_v14, 2 }
  0x84   :  { %v28_v16 = vadd.f32 %v27_v15, %v26_v14 }
  0x85   :  { %v36_v17 = vpop.xlane.xlu0 %35 }
  0x86   :  { %v37_v18 = vrot.slane %v36_v17, 4  ;;  %v29_v19 = vrot.slane %v28_v16, 1 }
  0x88   :  { %v38_v20 = vadd.f32 %v37_v18, %v36_v17  ;;  %v30_v21 = vadd.f32 %v29_v19, %v28_v16 }
  0x8a   :  { %v39_v22 = vrot.slane %v38_v20, 2  ;;  %63 = vpush %v30_v21 }
  0x8c   :  { %v40_v23 = vadd.f32 %v39_v22, %v38_v20 }
  0x8e   :  { %v41_v24 = vrot.slane %v40_v23, 1 }
  0x90   :  { %v42_v25 = vadd.f32 %v41_v24, %v40_v23 }
  0x92   :  { %65 = vpush %v42_v25 }
  0xbb   :  { %s64_s0 = spop %63 }
  0xbc   :  { %33 = sst [smem:[#allocation2]] %s64_s0 }
  0xc3   :  { %s66_s19 = spop %65 }
  0xc4   :  { %45 = sst [smem:[#allocation2 + $0x1]] %s66_s19 }
  0xc5   :  { %54 = dma.smem_to_vmem %s82_s20, 16, %s52_s18, [#allocation3]  }
  0xc6   :  { %80 = dma.done.wait [#allocation3], 16  }
  0xc7   :  { %81 = vsyncadd [#allocation3], 4294967280 }
  0xc8   :  { %59 = sfence }
  0xc9   :  { %60 = vsyncpa [#allocation3], 1 }

</bundles_post_ra>
